<compile_context>
chip_gen: v6e
topology: v6e:2x2x1
jax: 0.10.0
libtpu: 0.0.40
codegen_flags: <defaults>
</compile_context>

<pallas_src>
import math
import functools

import jax
import jax.numpy as jnp
from jax.experimental import pallas as pl
from jax.experimental.pallas import tpu as pltpu

# ---- module hyper-parameters (consistent with the torch ctor) --------------
IN_DIMS = [66, 32]          # in_dims
OUT_DIMS = [32, 66]         # out_dims  (out_dims[0] == in_dims[-1])
EMB_SIZE = 8                # time_emb_dim
STRUCT_DIM = 74             # struct_emb_dim; note IN_DIMS[0] + EMB_SIZE == 74
MAX_PERIOD = 10000.0
OUT_PAD = 128               # lane-dense padded width for the final projection

assert IN_DIMS[0] + EMB_SIZE == STRUCT_DIM
assert OUT_DIMS[0] == IN_DIMS[-1]
assert OUT_PAD >= OUT_DIMS[-1] and OUT_PAD % 128 == 0


def dnn_kernel(x_ref, ts_ref, se_ref, kt_ref,
               wqx_ref, wcs_ref, bq_ref,
               wi_ref, bi_ref,
               wo_ref, bo_ref,
               o_ref):
    f32 = jnp.float32
    bf16 = jnp.bfloat16
    half = EMB_SIZE // 2

    # --- timestep embedding te = [cos(t*f) | sin(t*f)] built in-register -----
    # freqs are reconstructed from a lane iota (no DMA'd constant needed).
    lane = jax.lax.broadcasted_iota(jnp.int32, (1, EMB_SIZE), 1)        # [1,8]
    fexp = jnp.where(lane < half, lane, lane - half).astype(f32)
    freqs = jnp.exp(fexp * jnp.float32(-math.log(MAX_PERIOD) / half))   # [1,8]
    args = ts_ref[...] * freqs                                          # [TB,8]
    te = jnp.where(lane < half, jnp.cos(args), jnp.sin(args))           # [TB,8]

    # TODO(synk): Dropout(p=0.5) on x is eval-mode identity; norm=False path.

    # --- queries: cat([x, emb_layer(time_emb)]) @ Wq + bq, with emb_layer
    #     folded into a single merged [8,74] weight (bf16 MXU, f32 accumulate) -
    q = (jnp.dot(x_ref[...], wqx_ref[...], preferred_element_type=f32)
         + jnp.dot(te.astype(bf16), wcs_ref[...], preferred_element_type=f32)
         + bq_ref[...])                                                 # [TB,74]

    # --- attention: softmax(q @ kT) @ struct_emb (kT precomputed outside) ----
    scores = jnp.dot(q.astype(bf16), kt_ref[...],
                     preferred_element_type=f32)                        # [TB,S]
    m = jnp.max(scores, axis=-1, keepdims=True)
    p = jnp.exp(scores - m)
    probs = p * pl.reciprocal(jnp.sum(p, axis=-1, keepdims=True), approx=True)
    weighted = jnp.dot(probs.astype(bf16), se_ref[...],
                       preferred_element_type=f32)                      # [TB,74]

    # --- in_layers (tanh) then out_layers (last layer linear, lane-padded) ---
    h = jnp.tanh(jnp.dot(weighted.astype(bf16), wi_ref[...],
                         preferred_element_type=f32) + bi_ref[...])     # [TB,32]
    o_ref[...] = (jnp.dot(h.astype(bf16), wo_ref[...],
                          preferred_element_type=f32)
                  + bo_ref[...]).astype(o_ref.dtype)                    # [TB,128]


def _round_up(v, m):
    return -(-v // m) * m


@functools.partial(jax.jit, static_argnames=("block_b", "return_padded"))
def dnn_forward(x, timesteps, struct_emb, params, *, block_b=2048,
                return_padded=False):
    f32, bf16 = jnp.float32, jnp.bfloat16
    B, D0 = x.shape
    S = struct_emb.shape[0]
    half = EMB_SIZE // 2
    out_dim = params["Wout"].shape[1]
    hid = params["Win"].shape[1]

    # ---- host-side (XLA) glue: batch-independent work, computed once --------
    wq_x = params["Wq"][:D0, :]
    wq_e = params["Wq"][D0:, :]
    # fold the (purely linear) emb_layer into the query projection, then merge
    # cos / sin paths into a single [8, 74] weight
    wc = params["Wemb"][:half, :] @ wq_e                       # [half, 74]
    ws = params["Wemb"][half:, :] @ wq_e                       # [half, 74]
    wcs = jnp.concatenate([wc, ws], axis=0).astype(bf16)       # [8, 74]
    bq = params["bemb"] @ wq_e + params["bq"]                  # [1, 74]

    # key projection is batch-independent: compute once, pass pre-transposed
    kT = (struct_emb.astype(f32) @ params["Wk"]
          + params["bk"]).T.astype(bf16)                       # [74, S]

    # lane-dense output: zero-pad the final projection to 128 columns
    wo = jnp.zeros((hid, OUT_PAD), f32).at[:, :out_dim].set(params["Wout"])
    bo = jnp.zeros((1, OUT_PAD), f32).at[:, :out_dim].set(params["bout"])

    # ---- batch tiling: big tiles, even grid (v7x TCs), pad only if needed ---
    tb = _round_up(min(block_b, _round_up(B, 16)), 16)
    if -(-B // tb) > 1:
        # multi-tile case: pick the largest tile <= block_b giving an even grid
        k = 1
        while _round_up(-(-B // (2 * k)), 16) > tb:
            k += 1
        tb = _round_up(-(-B // (2 * k)), 16)
    bp = _round_up(B, tb)

    x_bf = x.astype(bf16)                                      # halve x HBM read
    ts_f = timesteps.astype(f32).reshape(B, 1)
    if bp != B:                                                # pad only the tail case
        x_bf = jnp.pad(x_bf, ((0, bp - B), (0, 0)))
        ts_f = jnp.pad(ts_f, ((0, bp - B), (0, 0)))

    tile = lambda shape: pl.BlockSpec(shape, lambda i: (i, 0))
    resident = lambda shape: pl.BlockSpec(shape, lambda i: (0, 0))

    out = pl.pallas_call(
        dnn_kernel,
        out_shape=jax.ShapeDtypeStruct((bp, OUT_PAD), f32),
        grid=(bp // tb,),
        in_specs=[
            tile((tb, D0)),                    # x (bf16, streams with B)
            tile((tb, 1)),                     # timesteps (f32, streams with B)
            resident((S, STRUCT_DIM)),         # struct_emb (bf16)
            resident((STRUCT_DIM, S)),         # kT (bf16, pre-transposed)
            resident((D0, STRUCT_DIM)),        # Wq_x (bf16)
            resident((EMB_SIZE, STRUCT_DIM)),  # merged cos|sin weight (bf16)
            resident((1, STRUCT_DIM)),         # fused query bias (f32)
            resident((STRUCT_DIM, hid)),       # Win (bf16)
            resident((1, hid)),                # bin (f32)
            resident((hid, OUT_PAD)),          # Wout (bf16, lane-padded)
            resident((1, OUT_PAD)),            # bout (f32, lane-padded)
        ],
        out_specs=tile((tb, OUT_PAD)),
        compiler_params=pltpu.CompilerParams(
            dimension_semantics=("parallel",)),
    )(x_bf, ts_f, struct_emb.astype(bf16), kT,
      wq_x.astype(bf16), wcs, bq,
      params["Win"].astype(bf16), params["bin"],
      wo.astype(bf16), bo)

    if return_padded:
        # lane/row-padded (bp, 128) buffer; a fused consumer can slice lazily
        return out
    return out[:B, :out_dim]


def dnn_reference(x, timesteps, struct_emb, params):
    """Pure-JAX f32 mirror of the torch forward (eval mode) for validation."""
    half = EMB_SIZE // 2
    freqs = jnp.exp(-math.log(MAX_PERIOD)
                    * jnp.arange(half, dtype=jnp.float32) / half)
    targs = timesteps.astype(jnp.float32)[:, None] * freqs[None]
    te = jnp.concatenate([jnp.cos(targs), jnp.sin(targs)], axis=-1)
    emb = te @ params["Wemb"] + params["bemb"]
    h = jnp.concatenate([x, emb], axis=-1)
    q = h @ params["Wq"] + params["bq"]
    k = struct_emb @ params["Wk"] + params["bk"]
    probs = jax.nn.softmax(q @ k.T, axis=-1)
    w = probs @ struct_emb
    h = jnp.tanh(w @ params["Win"] + params["bin"])
    return h @ params["Wout"] + params["bout"]


def init_params(key):
    """Deterministic init mirroring DNN.init_weights (xavier-ish normal)."""
    def linear(key, d_in, d_out, std=None):
        kw, kb = jax.random.split(key)
        if std is None:
            std = math.sqrt(2.0 / (d_in + d_out))
        w = std * jax.random.normal(kw, (d_in, d_out), jnp.float32)  # [in,out]
        b = 0.001 * jax.random.normal(kb, (1, d_out), jnp.float32)
        return w, b

    ks = jax.random.split(key, 5)
    params = {}
    params["Wq"], params["bq"] = linear(ks[0], STRUCT_DIM, STRUCT_DIM)
    params["Wk"], params["bk"] = linear(ks[1], STRUCT_DIM, STRUCT_DIM)
    params["Wemb"], params["bemb"] = linear(ks[2], EMB_SIZE, EMB_SIZE)
    # in_layers: [in_dims[0]+emb_size] + in_dims[1:] -> single Linear(74, 32)
    params["Win"], params["bin"] = linear(ks[3], IN_DIMS[0] + EMB_SIZE, IN_DIMS[1])
    # out_layers: out_dims -> single Linear(32, 66)
    params["Wout"], params["bout"] = linear(ks[4], OUT_DIMS[0], OUT_DIMS[1])
    return params


if __name__ == "__main__":
    root = jax.random.PRNGKey(0)
    k_x, k_se, k_p, k_x2, k_x3 = jax.random.split(root, 5)
    params = init_params(k_p)

    S = 16
    struct_emb = jax.random.normal(k_se, (S, STRUCT_DIM), jnp.float32)

    def check(out, ref, label):
        # bf16 MXU operands (f32 accumulate) + approx reciprocal perturb the
        # attention scores, which the softmax amplifies on near-tied rows:
        # the bulk of elements must match tightly (mean check), while the
        # worst-case bound is sized for bf16 rounding through the attention.
        err = jnp.abs(out - ref)
        mean_err = float(jnp.mean(err))
        max_err = float(jnp.max(err))
        assert mean_err < 2e-2, (label, mean_err)
        assert jnp.allclose(out, ref, atol=1.5e-1, rtol=1e-1), (label, max_err)

    # --- 1) tiny batch: single grid step, batch tail-padded 8 -> 16 ----------
    B = 8
    x = jax.random.normal(k_x, (B, IN_DIMS[0]), jnp.float32)
    timesteps = jnp.arange(B, dtype=jnp.int32) * 37
    out = jax.block_until_ready(dnn_forward(x, timesteps, struct_emb, params))
    assert out.shape == (B, OUT_DIMS[-1]), out.shape
    check(out, dnn_reference(x, timesteps, struct_emb, params), "B=8")

    # --- 2) multi-tile even grid (4 x 256 rows), no batch padding needed -----
    B2 = 1024
    x2 = jax.random.normal(k_x2, (B2, IN_DIMS[0]), jnp.float32)
    ts2 = (jnp.arange(B2, dtype=jnp.int32) * 7) % 300
    out2 = jax.block_until_ready(
        dnn_forward(x2, ts2, struct_emb, params, block_b=256))
    assert out2.shape == (B2, OUT_DIMS[-1]), out2.shape
    check(out2, dnn_reference(x2, ts2, struct_emb, params), "B=1024")

    # --- 3) remainder path: B=600 -> one 608-row tile (tail padded) ----------
    B3 = 600
    x3 = jax.random.normal(k_x3, (B3, IN_DIMS[0]), jnp.float32)
    ts3 = (jnp.arange(B3, dtype=jnp.int32) * 13) % 1000
    out3 = jax.block_until_ready(dnn_forward(x3, ts3, struct_emb, params))
    assert out3.shape == (B3, OUT_DIMS[-1]), out3.shape
    check(out3, dnn_reference(x3, ts3, struct_emb, params), "B=600")

    print("KERNEL_OK")
</pallas_src>

<mosaic_0001>
module attributes {stable_mosaic.version = 11 : i64} {
  func.func @dnn_kernel(%arg0: i32, %arg1: memref<16x66xbf16, #tpu.memory_space<vmem>>, %arg2: memref<16x1xf32, #tpu.memory_space<vmem>>, %arg3: memref<16x74xbf16, #tpu.memory_space<vmem>>, %arg4: memref<74x16xbf16, #tpu.memory_space<vmem>>, %arg5: memref<66x74xbf16, #tpu.memory_space<vmem>>, %arg6: memref<8x74xbf16, #tpu.memory_space<vmem>>, %arg7: memref<1x74xf32, #tpu.memory_space<vmem>>, %arg8: memref<74x32xbf16, #tpu.memory_space<vmem>>, %arg9: memref<1x32xf32, #tpu.memory_space<vmem>>, %arg10: memref<32x128xbf16, #tpu.memory_space<vmem>>, %arg11: memref<1x128xf32, #tpu.memory_space<vmem>>, %arg12: memref<16x128xf32, #tpu.memory_space<vmem>>) attributes {dimension_semantics = [#tpu.dimension_semantics<parallel>], iteration_bounds = array<i64: 1>, scalar_prefetch = 0 : i64, scratch_operands = 0 : i64, tpu.core_type = #tpu.core_type<tc>, window_params = [{transform_indices = @transform_0, window_bounds = array<i64: 16, 66>}, {transform_indices = @transform_1, window_bounds = array<i64: 16, 1>}, {pipeline_mode = #tpu.pipeline_mode<synchronous>, transform_indices = @transform_2, window_bounds = array<i64: 16, 74>}, {pipeline_mode = #tpu.pipeline_mode<synchronous>, transform_indices = @transform_3, window_bounds = array<i64: 74, 16>}, {pipeline_mode = #tpu.pipeline_mode<synchronous>, transform_indices = @transform_4, window_bounds = array<i64: 66, 74>}, {pipeline_mode = #tpu.pipeline_mode<synchronous>, transform_indices = @transform_5, window_bounds = array<i64: 8, 74>}, {pipeline_mode = #tpu.pipeline_mode<synchronous>, transform_indices = @transform_6, window_bounds = array<i64: 1, 74>}, {pipeline_mode = #tpu.pipeline_mode<synchronous>, transform_indices = @transform_7, window_bounds = array<i64: 74, 32>}, {pipeline_mode = #tpu.pipeline_mode<synchronous>, transform_indices = @transform_8, window_bounds = array<i64: 1, 32>}, {pipeline_mode = #tpu.pipeline_mode<synchronous>, transform_indices = @transform_9, window_bounds = array<i64: 32, 128>}, {pipeline_mode = #tpu.pipeline_mode<synchronous>, transform_indices = @transform_10, window_bounds = array<i64: 1, 128>}, {transform_indices = @transform_11, window_bounds = array<i64: 16, 128>}]} {
    %0 = tpu.iota {dimensions = array<i32: 1>} : vector<1x8xi32>
    %c4_i32 = arith.constant 4 : i32
    %1 = vector.broadcast %c4_i32 : i32 to vector<1x8xi32>
    %2 = arith.cmpi slt, %0, %1 : vector<1x8xi32>
    %c4_i32_0 = arith.constant 4 : i32
    %3 = vector.broadcast %c4_i32_0 : i32 to vector<1x8xi32>
    %4 = arith.subi %0, %3 : vector<1x8xi32>
    %5 = arith.select %2, %0, %4 : vector<1x8xi1>, vector<1x8xi32>
    %6 = arith.sitofp %5 : vector<1x8xi32> to vector<1x8xf32>
    %cst = arith.constant -2.30258512 : f32
    %7 = vector.broadcast %cst : f32 to vector<1x8xf32>
    %8 = arith.mulf %6, %7 : vector<1x8xf32>
    %9 = math.exp %8 : vector<1x8xf32>
    %c0 = arith.constant 0 : index
    %c0_1 = arith.constant 0 : index
    %10 = vector.load %arg2[%c0, %c0_1] : memref<16x1xf32, #tpu.memory_space<vmem>>, vector<16x1xf32>
    %11 = vector.broadcast %10 : vector<16x1xf32> to vector<16x8xf32>
    %12 = vector.broadcast %9 : vector<1x8xf32> to vector<16x8xf32>
    %13 = arith.mulf %11, %12 : vector<16x8xf32>
    %c4_i32_2 = arith.constant 4 : i32
    %14 = vector.broadcast %c4_i32_2 : i32 to vector<1x8xi32>
    %15 = arith.cmpi slt, %0, %14 : vector<1x8xi32>
    %16 = math.cos %13 : vector<16x8xf32>
    %17 = math.sin %13 : vector<16x8xf32>
    %18 = vector.shape_cast %15 : vector<1x8xi1> to vector<1x8xi1>
    %19 = vector.broadcast %18 : vector<1x8xi1> to vector<16x8xi1>
    %20 = arith.select %19, %16, %17 : vector<16x8xi1>, vector<16x8xf32>
    %c0_3 = arith.constant 0 : index
    %c0_4 = arith.constant 0 : index
    %21 = vector.load %arg1[%c0_3, %c0_4] : memref<16x66xbf16, #tpu.memory_space<vmem>>, vector<16x66xbf16>
    %c0_5 = arith.constant 0 : index
    %c0_6 = arith.constant 0 : index
    %22 = vector.load %arg5[%c0_5, %c0_6] : memref<66x74xbf16, #tpu.memory_space<vmem>>, vector<66x74xbf16>
    %cst_7 = arith.constant dense<0.000000e+00> : vector<16x74xf32>
    %23 = tpu.matmul %21, %22, %cst_7 {dimension_numbers = #tpu.dot_dimension_numbers<[1], [0], [0], [1], [0, 0, 1, 1], [], []>} : vector<16x66xbf16>, vector<66x74xbf16>, vector<16x74xf32> -> vector<16x74xf32>
    %24 = arith.truncf %20 : vector<16x8xf32> to vector<16x8xbf16>
    %c0_8 = arith.constant 0 : index
    %c0_9 = arith.constant 0 : index
    %25 = vector.load %arg6[%c0_8, %c0_9] : memref<8x74xbf16, #tpu.memory_space<vmem>>, vector<8x74xbf16>
    %cst_10 = arith.constant dense<0.000000e+00> : vector<16x74xf32>
    %26 = tpu.matmul %24, %25, %cst_10 {dimension_numbers = #tpu.dot_dimension_numbers<[1], [0], [0], [1], [0, 0, 1, 1], [], []>} : vector<16x8xbf16>, vector<8x74xbf16>, vector<16x74xf32> -> vector<16x74xf32>
    %27 = arith.addf %23, %26 : vector<16x74xf32>
    %c0_11 = arith.constant 0 : index
    %c0_12 = arith.constant 0 : index
    %28 = vector.load %arg7[%c0_11, %c0_12] : memref<1x74xf32, #tpu.memory_space<vmem>>, vector<1x74xf32>
    %29 = vector.broadcast %28 : vector<1x74xf32> to vector<16x74xf32>
    %30 = arith.addf %27, %29 : vector<16x74xf32>
    %31 = arith.truncf %30 : vector<16x74xf32> to vector<16x74xbf16>
    %c0_13 = arith.constant 0 : index
    %c0_14 = arith.constant 0 : index
    %32 = vector.load %arg4[%c0_13, %c0_14] : memref<74x16xbf16, #tpu.memory_space<vmem>>, vector<74x16xbf16>
    %cst_15 = arith.constant dense<0.000000e+00> : vector<16x16xf32>
    %33 = tpu.matmul %31, %32, %cst_15 {dimension_numbers = #tpu.dot_dimension_numbers<[1], [0], [0], [1], [0, 0, 1, 1], [], []>} : vector<16x74xbf16>, vector<74x16xbf16>, vector<16x16xf32> -> vector<16x16xf32>
    %cst_16 = arith.constant dense<0xFF800000> : vector<16xf32>
    %34 = vector.multi_reduction <maximumf>, %33, %cst_16 [1] : vector<16x16xf32> to vector<16xf32>
    %35 = vector.shape_cast %34 : vector<16xf32> to vector<16x1xf32>
    %36 = vector.broadcast %35 : vector<16x1xf32> to vector<16x16xf32>
    %37 = arith.subf %33, %36 : vector<16x16xf32>
    %38 = math.exp %37 : vector<16x16xf32>
    %cst_17 = arith.constant dense<0.000000e+00> : vector<16xf32>
    %39 = vector.multi_reduction <add>, %38, %cst_17 [1] : vector<16x16xf32> to vector<16xf32>
    %40 = vector.shape_cast %39 : vector<16xf32> to vector<16x1xf32>
    %41 = tpu.reciprocal %40 {approx = true} : vector<16x1xf32> -> vector<16x1xf32>
    %42 = vector.broadcast %41 : vector<16x1xf32> to vector<16x16xf32>
    %43 = arith.mulf %38, %42 : vector<16x16xf32>
    %44 = arith.truncf %43 : vector<16x16xf32> to vector<16x16xbf16>
    %c0_18 = arith.constant 0 : index
    %c0_19 = arith.constant 0 : index
    %45 = vector.load %arg3[%c0_18, %c0_19] : memref<16x74xbf16, #tpu.memory_space<vmem>>, vector<16x74xbf16>
    %cst_20 = arith.constant dense<0.000000e+00> : vector<16x74xf32>
    %46 = tpu.matmul %44, %45, %cst_20 {dimension_numbers = #tpu.dot_dimension_numbers<[1], [0], [0], [1], [0, 0, 1, 1], [], []>} : vector<16x16xbf16>, vector<16x74xbf16>, vector<16x74xf32> -> vector<16x74xf32>
    %47 = arith.truncf %46 : vector<16x74xf32> to vector<16x74xbf16>
    %c0_21 = arith.constant 0 : index
    %c0_22 = arith.constant 0 : index
    %48 = vector.load %arg8[%c0_21, %c0_22] : memref<74x32xbf16, #tpu.memory_space<vmem>>, vector<74x32xbf16>
    %cst_23 = arith.constant dense<0.000000e+00> : vector<16x32xf32>
    %49 = tpu.matmul %47, %48, %cst_23 {dimension_numbers = #tpu.dot_dimension_numbers<[1], [0], [0], [1], [0, 0, 1, 1], [], []>} : vector<16x74xbf16>, vector<74x32xbf16>, vector<16x32xf32> -> vector<16x32xf32>
    %c0_24 = arith.constant 0 : index
    %c0_25 = arith.constant 0 : index
    %50 = vector.load %arg9[%c0_24, %c0_25] : memref<1x32xf32, #tpu.memory_space<vmem>>, vector<1x32xf32>
    %51 = vector.broadcast %50 : vector<1x32xf32> to vector<16x32xf32>
    %52 = arith.addf %49, %51 : vector<16x32xf32>
    %53 = math.tanh %52 : vector<16x32xf32>
    %54 = arith.truncf %53 : vector<16x32xf32> to vector<16x32xbf16>
    %c0_26 = arith.constant 0 : index
    %c0_27 = arith.constant 0 : index
    %55 = vector.load %arg10[%c0_26, %c0_27] : memref<32x128xbf16, #tpu.memory_space<vmem>>, vector<32x128xbf16>
    %cst_28 = arith.constant dense<0.000000e+00> : vector<16x128xf32>
    %56 = tpu.matmul %54, %55, %cst_28 {dimension_numbers = #tpu.dot_dimension_numbers<[1], [0], [0], [1], [0, 0, 1, 1], [], []>} : vector<16x32xbf16>, vector<32x128xbf16>, vector<16x128xf32> -> vector<16x128xf32>
    %c0_29 = arith.constant 0 : index
    %c0_30 = arith.constant 0 : index
    %57 = vector.load %arg11[%c0_29, %c0_30] : memref<1x128xf32, #tpu.memory_space<vmem>>, vector<1x128xf32>
    %58 = vector.broadcast %57 : vector<1x128xf32> to vector<16x128xf32>
    %59 = arith.addf %56, %58 : vector<16x128xf32>
    %c0_31 = arith.constant 0 : index
    %c0_32 = arith.constant 0 : index
    %60 = vector.load %arg12[%c0_31, %c0_32] : memref<16x128xf32, #tpu.memory_space<vmem>>, vector<16x128xf32>
    tpu.vector_store %arg12[%c0_31, %c0_32], %59 {strides = array<i32>} : memref<16x128xf32, #tpu.memory_space<vmem>>, vector<16x128xf32>,
    return
  }
  func.func @transform_0(%arg0: i32) -> (i32, i32) {
    %c0_i32 = arith.constant 0 : i32
    %c0_i32_0 = arith.constant 0 : i32
    return %arg0, %c0_i32 : i32, i32
  }
  func.func @transform_1(%arg0: i32) -> (i32, i32) {
    %c0_i32 = arith.constant 0 : i32
    %c0_i32_0 = arith.constant 0 : i32
    return %arg0, %c0_i32 : i32, i32
  }
  func.func @transform_2(%arg0: i32) -> (i32, i32) {
    %c0_i32 = arith.constant 0 : i32
    %c0_i32_0 = arith.constant 0 : i32
    %c0_i32_1 = arith.constant 0 : i32
    return %c0_i32, %c0_i32_0 : i32, i32
  }
  func.func @transform_3(%arg0: i32) -> (i32, i32) {
    %c0_i32 = arith.constant 0 : i32
    %c0_i32_0 = arith.constant 0 : i32
    %c0_i32_1 = arith.constant 0 : i32
    return %c0_i32, %c0_i32_0 : i32, i32
  }
  func.func @transform_4(%arg0: i32) -> (i32, i32) {
    %c0_i32 = arith.constant 0 : i32
    %c0_i32_0 = arith.constant 0 : i32
    %c0_i32_1 = arith.constant 0 : i32
    return %c0_i32, %c0_i32_0 : i32, i32
  }
  func.func @transform_5(%arg0: i32) -> (i32, i32) {
    %c0_i32 = arith.constant 0 : i32
    %c0_i32_0 = arith.constant 0 : i32
    %c0_i32_1 = arith.constant 0 : i32
    return %c0_i32, %c0_i32_0 : i32, i32
  }
  func.func @transform_6(%arg0: i32) -> (i32, i32) {
    %c0_i32 = arith.constant 0 : i32
    %c0_i32_0 = arith.constant 0 : i32
    %c0_i32_1 = arith.constant 0 : i32
    return %c0_i32, %c0_i32_0 : i32, i32
  }
  func.func @transform_7(%arg0: i32) -> (i32, i32) {
    %c0_i32 = arith.constant 0 : i32
    %c0_i32_0 = arith.constant 0 : i32
    %c0_i32_1 = arith.constant 0 : i32
    return %c0_i32, %c0_i32_0 : i32, i32
  }
  func.func @transform_8(%arg0: i32) -> (i32, i32) {
    %c0_i32 = arith.constant 0 : i32
    %c0_i32_0 = arith.constant 0 : i32
    %c0_i32_1 = arith.constant 0 : i32
    return %c0_i32, %c0_i32_0 : i32, i32
  }
  func.func @transform_9(%arg0: i32) -> (i32, i32) {
    %c0_i32 = arith.constant 0 : i32
    %c0_i32_0 = arith.constant 0 : i32
    %c0_i32_1 = arith.constant 0 : i32
    return %c0_i32, %c0_i32_0 : i32, i32
  }
  func.func @transform_10(%arg0: i32) -> (i32, i32) {
    %c0_i32 = arith.constant 0 : i32
    %c0_i32_0 = arith.constant 0 : i32
    %c0_i32_1 = arith.constant 0 : i32
    return %c0_i32, %c0_i32_0 : i32, i32
  }
  func.func @transform_11(%arg0: i32) -> (i32, i32) {
    %c0_i32 = arith.constant 0 : i32
    %c0_i32_0 = arith.constant 0 : i32
    return %arg0, %c0_i32 : i32, i32
  }
}

</mosaic_0001>

<bundles_post_ra>
// kernel: dnn_forward.1
= control target key start
LH: loop header
LB: loop body
LE: loop exit
PB: predicated region body
PF: predicated region fallthrough
CT: control target
= control target key end

     0   :  { %v1159_v0 = vmov 0   ;;  %vm497_vm0 = vcmask 1043456   ;;  %v1160_v3 = vmov 0.0   ;;  %vm1161_vm1 = vmmov 0   ;;  %s1442_s1 = inlined_call_operand.vmem [shape: f32[16,1], index: 1, kind: input, shape index: {}]   ;;  %s1443_s5 = inlined_call_operand.vmem [shape: bf16[8,74], index: 5, kind: input, shape index: {}]   ;;  %s1444_s4 = inlined_call_operand.vmem [shape: bf16[66,74], index: 4, kind: input, shape index: {}]   ;;  %s1445_s0 = inlined_call_operand.vmem [shape: bf16[16,66], index: 0, kind: input, shape index: {}]   ;;  %s1446_s3 = inlined_call_operand.vmem [shape: bf16[74,16], index: 3, kind: input, shape index: {}]   ;;  %s1447_s7 = inlined_call_operand.vmem [shape: bf16[74,32], index: 7, kind: input, shape index: {}]   ;;  %s1448_s6 = inlined_call_operand.vmem [shape: f32[1,74], index: 6, kind: input, shape index: {}]   ;;  %s1449_s2 = inlined_call_operand.vmem [shape: bf16[16,74], index: 2, kind: input, shape index: {}]   ;;  %s1450_s9 = inlined_call_operand.vmem [shape: bf16[32,128], index: 9, kind: input, shape index: {}]   ;;  %s1451_s8 = inlined_call_operand.vmem [shape: f32[1,32], index: 8, kind: input, shape index: {}]   ;;  %s1452_s10 = inlined_call_operand.vmem [shape: f32[1,128], index: 10, kind: input, shape index: {}]   ;;  %s1453_s11 = inlined_call_operand.vmem [shape: f32[16,128], index: 11, kind: output, shape index: {}]  }
   0x1   :  { %1117 = vset.pattern.permute.xlu0 %v1159_v0  ;;  %v48_v1 = vld [vmem:[%s1442_s1] sm:$0xff]  ;;  %v49_v2 = vld [vmem:[%s1442_s1 + $0x8] sm:$0xff]  ;;  %1038 = vmatprep.subr.bf16.mxu1 %v1160_v3  ;;  %v39_v6 = vlaneseq  ;;  %v1162_v34 = vmov 683565275   ;;  %v1163_v38 = vmov 2475754826  }
   0x2   :  { %52 = vperm.xlu0 %1117, %v48_v1   ;;  %v492_v4 = vld [vmem:[%s1443_s5] sm:$0xf]  ;;  %1040 = vmatprep.mubr.msk.bf16.mxu1 %vm1161_vm1, %v1160_v3  ;;  %v1164_v40 = vmov 2131351028   ;;  %v1165_v42 = vmov 2102212464  }
   0x3   :  { %v499_v5 = vsel %vm497_vm0, %v492_v4, 0  ;;  %1058 = vmatprep.subr.bf16.mxu0 %v1160_v3  ;;  %1068 = vmatprep.mubr.msk.bf16.mxu0 %vm1161_vm1, %v1160_v3  ;;  %v1244_v7 = vand.u32 127, %v39_v6  ;;  %v1166_v44 = vmov 920167782   ;;  %v1167_v51 = vmov 1326507024  }
   0x4   :  { %1039 = vmatpush3.bf16.msra.mxu1 %v499_v5 }
   0x5   :  { %1044 = vmatprep.subr.bf16.mxu1 %v1160_v3  ;;  %v968_v8 = vadd.s32 4294967292, %v1244_v7  ;;  %vm41_vm2 = vcmp.lt.s32.totalorder %v1244_v7, 4 }
   0x6   :  { %57 = vperm.xlu0 %1117, %v49_v2  }
   0x7   :  { %v43_v9 = vsel %vm41_vm2, %v1244_v7, %v968_v8  ;;  %v1120_v7 = vld [vmem:[%s1444_s4 + $0x10] sm:$0xff]  }
   0x8   :  { %v44_v10 = vcvt.s32.f32 %v43_v9 }
   0xa   :  { %v45_v11 = vmul.f32 -2.3025851, %v44_v10 }
   0xc   :  { %v46_v12 = vmul.f32 1.442695, %v45_v11 }
   0xe   :  { %1137 = vpow2.f32 %v46_v12 }
  0x1b   :  { %v1138_v13 = vpop.eup %1137 }
  0x7d   :  { %v53_v14 = vpop.permute.xlu0 %52 }
  0x7e   :  { %v1251_v15 = vmul.f32 %v1138_v13, %v53_v14 }
  0x80   :  { %v62_v16 = vand.u32 2147483647, %v1251_v15  ;;  %v65_v17 = vand.u32 2139095040, %v1251_v15 }
  0x81   :  { %v58_v18 = vpop.permute.xlu0 %57 }
  0x82   :  { %v66_v19 = vshrl.u32 %v65_v17, 23  ;;  %v1255_v20 = vmul.f32 %v1138_v13, %v58_v18  ;;  %v69_v21 = vand.u32 8388607, %v62_v16 }
  0x84   :  { %v969_v22 = vadd.s32 4294967169, %v66_v19  ;;  %v168_v23 = vand.u32 2139095040, %v1255_v20  ;;  %v70_v25 = vor.u32 8388608, %v69_v21  ;;  %v165_v27 = vand.u32 2147483647, %v1255_v20 }
  0x86   :  { %v72_v24 = vadd.s32 1, %v969_v22  ;;  %v169_v26 = vshrl.u32 %v168_v23, 23  ;;  %v1261_v32 = vshll.u32 %v70_v25, 8  ;;  %v172_v36 = vand.u32 8388607, %v165_v27 }
  0x88   :  { %vm73_vm3 = vcmp.gt.s32.totalorder %v72_v24, 0  ;;  %v973_v29 = vadd.s32 4294967169, %v169_v26  ;;  %v173_v2 = vor.u32 8388608, %v172_v36 }
  0x89   :  { %v74_v28 = vsel %vm73_vm3, %v72_v24, 0  ;;  %vm64_vm3 = vcmp.lt.s32.totalorder %v1251_v15, 0 }
  0x8a   :  { %v75_v30 = vshrl.u32 %v74_v28, 5  ;;  %v76_v31 = vand.u32 31, %v74_v28  ;;  %v175_v37 = vadd.s32 1, %v973_v29  ;;  %v213_v19 = vshll.u32 %v173_v2, 8 }
  0x8c   :  { %v77_v33 = vsub.s32 32, %v76_v31  ;;  %v79_v35 = vshll.u32 %v1162_v34, %v76_v31  ;;  %v82_v39 = vshll.u32 %v1163_v38, %v76_v31  ;;  %v85_v41 = vshll.u32 %v1164_v40, %v76_v31 }
  0x8d   :  { %v88_v43 = vshll.u32 %v1165_v42, %v76_v31  ;;  %v91_v45 = vshll.u32 %v1166_v44, %v76_v31  ;;  %vm94_vm4 = vcmp.lt.s32.totalorder %v75_v30, 1  ;;  %vm96_vm5 = vcmp.lt.s32.totalorder %v75_v30, 3 }
  0x8e   :  { %v80_v46 = vshrl.u32 %v1163_v38, %v77_v33  ;;  %v83_v47 = vshrl.u32 %v1164_v40, %v77_v33  ;;  %v86_v48 = vshrl.u32 %v1165_v42, %v77_v33  ;;  %v78_v49 = vshrl.u32 %v1162_v34, %v77_v33 }
  0x8f   :  { %v89_v50 = vshrl.u32 %v1166_v44, %v77_v33  ;;  %v92_v52 = vshrl.u32 %v1167_v51, %v77_v33  ;;  %vm176_vm6 = vcmp.gt.s32.totalorder %v175_v37, 0  ;;  %vm97_vm7 = vcmp.lt.s32.totalorder %v75_v30, 4 }
  0x90   :  { %v81_v53 = vor.u32 %v80_v46, %v79_v35  ;;  %v84_v54 = vor.u32 %v83_v47, %v82_v39  ;;  %v87_v55 = vor.u32 %v86_v48, %v85_v41  ;;  %v177_v58 = vsel %vm176_vm6, %v175_v37, 0 }
  0x91   :  { %v90_v56 = vor.u32 %v89_v50, %v88_v43  ;;  %v93_v57 = vor.u32 %v92_v52, %v91_v45  ;;  %vm95_vm8 = vcmp.lt.s32.totalorder %v75_v30, 2  ;;  %v179_v6 = vand.u32 31, %v177_v58 }
  0x92   :  { %v98_v59 = vsel %vm94_vm4, %v78_v49, %v81_v53  ;;  %v99_v60 = vsel %vm97_vm7, %v87_v55, 2102212464  ;;  %v102_v61 = vsel %vm94_vm4, %v81_v53, %v84_v54  ;;  %v106_v62 = vsel %vm94_vm4, %v84_v54, %v87_v55 }
  0x93   :  { %v100_v63 = vsel %vm96_vm5, %v84_v54, %v99_v60  ;;  %v103_v0 = vsel %vm97_vm7, %v90_v56, 920167782  ;;  %v107_v1 = vsel %vm97_vm7, %v93_v57, 1326507024  ;;  %v178_v17 = vshrl.u32 %v177_v58, 5 }
  0x94   :  { %v104_v4 = vsel %vm96_vm5, %v87_v55, %v103_v0  ;;  %v108_v5 = vsel %vm96_vm5, %v90_v56, %v107_v1  ;;  %v101_v8 = vsel %vm95_vm8, %v98_v59, %v100_v63  ;;  %v180_v18 = vsub.s32 32, %v179_v6 }
  0x95   :  { %v105_v9 = vsel %vm95_vm8, %v102_v61, %v104_v4  ;;  %v109_v10 = vsel %vm95_vm8, %v106_v62, %v108_v5  ;;  %v117_v21 = vmul.u32 %v1261_v32, %v101_v8  ;;  %v182_v22 = vshll.u32 %v1162_v34, %v179_v6 }
  0x96   :  { %v1274_v11 = vmul.u32.u64.low %v1261_v32, %v109_v10  ;;  %v1275_v12 = vmul.u32.u64.high %v1261_v32, %v109_v10, %v1274_v11  ;;  %v1278_v13 = vmul.u32.u64.low %v1261_v32, %v105_v9  ;;  %v1279_v14 = vmul.u32.u64.high %v1261_v32, %v105_v9, %v1278_v13 }
  0x97   :  { %v185_v23 = vshll.u32 %v1163_v38, %v179_v6  ;;  %v188_v24 = vshll.u32 %v1164_v40, %v179_v6  ;;  %v183_v25 = vshrl.u32 %v1163_v38, %v180_v18  ;;  %v186_v26 = vshrl.u32 %v1164_v40, %v180_v18 }
  0x98   :  { %v189_v28 = vshrl.u32 %v1165_v42, %v180_v18  ;;  %v191_v29 = vshll.u32 %v1165_v42, %v179_v6  ;;  %vm119_vm9 = vc.u32 %v1275_v12, %v1278_v13  ;;  %v120_v30 = vadd.s32 1, %v1279_v14 }
  0x99   :  { %v192_v31 = vshrl.u32 %v1166_v44, %v180_v18  ;;  %v194_v33 = vshll.u32 %v1166_v44, %v179_v6  ;;  %v184_v35 = vor.u32 %v183_v25, %v182_v22  ;;  %v187_v36 = vor.u32 %v186_v26, %v185_v23 }
  0x9a   :  { %v190_v37 = vor.u32 %v189_v28, %v188_v24  ;;  %v195_v39 = vshrl.u32 %v1167_v51, %v180_v18  ;;  %v121_v32 = vsel %vm119_vm9, %v120_v30, %v1279_v14  ;;  %vm197_vm10 = vcmp.lt.s32.totalorder %v178_v17, 1 }
  0x9b   :  { %v193_v41 = vor.u32 %v192_v31, %v191_v29  ;;  %vm200_vm11 = vcmp.lt.s32.totalorder %v178_v17, 4  ;;  %v122_v38 = vadd.s32 %v121_v32, %v117_v21  ;;  %vm199_vm12 = vcmp.lt.s32.totalorder %v178_v17, 3 }
  0x9c   :  { %v196_v40 = vor.u32 %v195_v39, %v194_v33  ;;  %v202_v42 = vsel %vm200_vm11, %v190_v37, 2102212464  ;;  %v181_v43 = vshrl.u32 %v1162_v34, %v180_v18  ;;  %v205_v45 = vsel %vm197_vm10, %v184_v35, %v187_v36 }
  0x9d   :  { %v206_v46 = vsel %vm200_vm11, %v193_v41, 920167782  ;;  %v209_v47 = vsel %vm197_vm10, %v187_v36, %v190_v37  ;;  %v123_v48 = vadd.s32 536870912, %v122_v38  ;;  %vm198_vm13 = vcmp.lt.s32.totalorder %v178_v17, 2 }
  0x9e   :  { %v207_v44 = vsel %vm199_vm12, %v190_v37, %v206_v46  ;;  %v210_v49 = vsel %vm200_vm11, %v196_v40, 1326507024  ;;  %v201_v50 = vsel %vm197_vm10, %v181_v43, %v184_v35  ;;  %v203_v51 = vsel %vm199_vm12, %v187_v36, %v202_v42  ;;  %v1129_v42 = vld [vmem:[%s1446_s3] sm:$0xff]  }
  0x9f   :  { %v208_v52 = vsel %vm198_vm13, %v205_v45, %v207_v44  ;;  %v211_v53 = vsel %vm199_vm12, %v193_v41, %v210_v49  ;;  %v1289_v54 = vshrl.u32 %v123_v48, 30  ;;  %v204_v60 = vsel %vm198_vm13, %v201_v50, %v203_v51 }
  0xa0   :  { %v212_v55 = vsel %vm198_vm13, %v209_v47, %v211_v53  ;;  %v1291_v56 = vmul.u32.u64.low %v213_v19, %v208_v52  ;;  %v1292_v57 = vmul.u32.u64.high %v213_v19, %v208_v52, %v1291_v56  ;;  %v220_v63 = vmul.u32 %v213_v19, %v204_v60 }
  0xa1   :  { %v1294_v58 = vmul.u32.u64.low %v213_v19, %v212_v55  ;;  %v1295_v59 = vmul.u32.u64.high %v213_v19, %v212_v55, %v1294_v58  ;;  %v125_v34 = vshll.u32 %v1289_v54, 30  ;;  %v118_v17 = vadd.s32 %v1278_v13, %v1275_v12 }
  0xa2   :  { %v223_v62 = vadd.s32 1, %v1292_v57  ;;  %vm1307_vm4 = vcmp.le.f32.partialorder %v62_v16, 0.7853982  ;;  %v148_v44 = vsub.s32 4, %v1289_v54  ;;  %vm167_vm5 = vcmp.lt.s32.totalorder %v1255_v20, 0 }
  0xa3   :  { %v126_v61 = vsub.s32 %v122_v38, %v125_v34  ;;  %vm222_vm14 = vc.u32 %v1295_v59, %v1291_v56  ;;  %v221_v39 = vadd.s32 %v1291_v56, %v1295_v59  ;;  %vm166_vm6 = vcmp.le.f32.partialorder %v165_v27, 0.7853982 }
  0xa4   :  { %v224_v1 = vsel %vm222_vm14, %v223_v62, %v1292_v57  ;;  %v149_v51 = vsel %vm64_vm3, %v148_v44, %v1289_v54  ;;  %vm154_vm11 = vweird.f32 %v1251_v15 }
  0xa5   :  { %v128_v0 = vsub.s32 0, %v126_v61  ;;  %v225_v2 = vadd.s32 %v224_v1, %v220_v63  ;;  %v151_v56 = vsel %vm1307_vm4, 0, %v149_v51  ;;  %v1125_v51 = vld [vmem:[%s1447_s7 + $0x20] sm:$0x1f]  }
  0xa6   :  { %v361_v59 = vadd.s32 3, %v151_v56 }
  0xa7   :  { %v970_v4 = vmin.u32 %v128_v0, %v126_v61  ;;  %v226_v5 = vadd.s32 536870912, %v225_v2 }
  0xa8   :  { %v362_v62 = vand.u32 3, %v361_v59 }
  0xa9   :  { %v130_v6 = vclz %v970_v4  ;;  %v227_v8 = vshrl.u32 %v226_v5, 30 }
  0xaa   :  { %vm364_vm9 = vcmp.eq.s32.totalorder %v362_v62, 0  ;;  %vm367_vm10 = vcmp.eq.s32.totalorder %v362_v62, 2  ;;  %vm363_vm13 = vcmp.lt.s32.totalorder %v362_v62, 2 }
  0xab   :  { %v971_v9 = vadd.s32 4294967294, %v130_v6  ;;  %v228_v10 = vshll.u32 %v227_v8, 30  ;;  %v251_v53 = vsub.s32 4, %v227_v8 }
  0xad   :  { %vm972_vm15 = vcmp.lt.s32.totalorder %v971_v9, 0  ;;  %v229_v14 = vsub.s32 %v225_v2, %v228_v10  ;;  %v252_v58 = vsel %vm167_vm5, %v251_v53, %v227_v8 }
  0xae   :  { %v133_v11 = vsel %vm972_vm15, 0, %v971_v9  ;;  %v254_v60 = vsel %vm166_vm6, 0, %v252_v58 }
  0xaf   :  { %v134_v18 = vsub.s32 32, %v133_v11  ;;  %v138_v19 = vsub.s32 4294967266, %v133_v11  ;;  %v231_v21 = vsub.s32 0, %v229_v14  ;;  %v135_v22 = vshll.u32 %v126_v61, %v133_v11 }
  0xb0   :  { %v155_v61 = vand.u32 3, %v151_v56  ;;  %v465_v63 = vadd.s32 3, %v254_v60  ;;  %v258_v27 = vand.u32 3, %v254_v60 }
  0xb1   :  { %v136_v23 = vshrl.u32 %v118_v17, %v134_v18  ;;  %v139_v24 = vadd.s32 127, %v138_v19  ;;  %v974_v25 = vmin.u32 %v231_v21, %v229_v14 }
  0xb2   :  { %vm157_vm7 = vcmp.eq.s32.totalorder %v155_v61, 0  ;;  %vm160_vm8 = vcmp.eq.s32.totalorder %v155_v61, 2  ;;  %v466_v2 = vand.u32 3, %v465_v63  ;;  %vm156_vm12 = vcmp.lt.s32.totalorder %v155_v61, 2 }
  0xb3   :  { %v137_v26 = vor.u32 %v136_v23, %v135_v22  ;;  %v140_v28 = vshll.u32 %v139_v24, 23  ;;  %v233_v29 = vclz %v974_v25  ;;  %vm259_vm14 = vcmp.lt.s32.totalorder %v258_v27, 2 }
  0xb4   :  { %vm260_vm15 = vcmp.eq.s32.totalorder %v258_v27, 0 }
  0xb5   :  { %v141_v30 = vor.u32 4788187, %v140_v28  ;;  %v975_v31 = vadd.s32 4294967294, %v233_v29  ;;  %v144_v35 = vcvt.s32.f32 %v137_v26  ;;  %v1118_v26 = vld [vmem:[%s1444_s4 + $0x20] ss:$0 sps:$4 sm:$0x11]  }
  0xb7   :  { %v142_v33 = vand.u32 2147483647, %v141_v30  ;;  %vm976_vm0 = vcmp.lt.s32.totalorder %v975_v31, 0 }
  0xb8   :  { %v236_v37 = vsel %vm976_vm0, 0, %v975_v31  ;;  %vm263_vm0 = vcmp.eq.s32.totalorder %v258_v27, 2 }
  0xb9   :  { %v145_v36 = vmul.f32 %v144_v35, %v142_v33  ;;  %v237_v12 = vsub.s32 32, %v236_v37  ;;  %v241_v13 = vsub.s32 4294967266, %v236_v37  ;;  %v238_v41 = vshll.u32 %v229_v14, %v236_v37  ;;  %v1121_v37 = vld [vmem:[%s1444_s4 + $0x8] sm:$0xff]  }
  0xbb   :  { %v146_v32 = vxor.u32 2147483648, %v145_v36  ;;  %v239_v38 = vshrl.u32 %v221_v39, %v237_v12  ;;  %v242_v40 = vadd.s32 127, %v241_v13  ;;  %v1122_v39 = vld [vmem:[%s1444_s4] sm:$0xff]  }
  0xbc   :  { %v1123_v12 = vld [vmem:[%s1445_s0] sm:$0xff]  }
  0xbd   :  { %v147_v43 = vsel %vm64_vm3, %v146_v32, %v145_v36  ;;  %v240_v46 = vor.u32 %v239_v38, %v238_v41  ;;  %v243_v47 = vshll.u32 %v242_v40, 23  ;;  %vm471_vm3 = vcmp.eq.s32.totalorder %v466_v2, 2  ;;  %v1124_v13 = vld [vmem:[%s1446_s3 + $0x20] sm:$0x1f]   ;;  %v1126_v41 = vld [vmem:[%s1446_s3 + $0x18] sm:$0xff]   ;;  %v1127_v38 = vld [vmem:[%s1446_s3 + $0x10] sm:$0xff]  }
  0xbe   :  { %v150_v45 = vsel %vm1307_vm4, %v1251_v15, %v147_v43  ;;  %vm467_vm4 = vcmp.lt.s32.totalorder %v466_v2, 2  ;;  %v1128_v40 = vld [vmem:[%s1446_s3 + $0x8] sm:$0xff]  }
  0xbf   :  { %1139 = vcosq.f32 %v150_v45  ;;  %v244_v48 = vor.u32 4788187, %v243_v47  ;;  %v247_v50 = vcvt.s32.f32 %v240_v46 }
  0xc0   :  { %1141 = vsinq.f32 %v150_v45 }
  0xc1   :  { %v245_v49 = vand.u32 2147483647, %v244_v48 }
  0xc3   :  { %v248_v16 = vmul.f32 %v247_v50, %v245_v49  ;;  %v993_v50 = vld [vmem:[%s1448_s6] ss:$0 sm:$0xff] }
  0xc5   :  { %v249_v52 = vxor.u32 2147483648, %v248_v16 }
  0xc7   :  { %v250_v55 = vsel %vm167_vm5, %v249_v52, %v248_v16  ;;  %vm468_vm5 = vcmp.eq.s32.totalorder %v466_v2, 0 }
  0xc8   :  { %v253_v57 = vsel %vm166_vm6, %v1255_v20, %v250_v55  ;;  %vm257_vm6 = vweird.f32 %v1255_v20  ;;  %v1119_v20 = vld [vmem:[%s1444_s4 + $0x18] sm:$0xff]  }
  0xc9   :  { %1143 = vcosq.f32 %v253_v57 }
  0xca   :  { %1145 = vsinq.f32 %v253_v57 }
  0xcc   :  { %v1140_v34 = vpop.eup %1139 }
  0xcd   :  { %v1142_v54 = vpop.eup %1141  ;;  %v161_v1 = vxor.u32 2147483648, %v1140_v34 }
  0xce   :  { %v158_v0 = vxor.u32 2147483648, %v1142_v54 }
  0xcf   :  { %v162_v5 = vsel %vm160_vm8, %v161_v1, %v1142_v54  ;;  %v369_v8 = vsel %vm367_vm10, %v161_v1, %v1142_v54  ;;  %vm493_vm8 = vcmask 64512   ;;  %vm672_vm10 = vcmask 605184  }
  0xd0   :  { %v159_v4 = vsel %vm157_vm7, %v1140_v34, %v158_v0  ;;  %v366_v6 = vsel %vm364_vm9, %v1140_v34, %v158_v0  ;;  %vm578_vm7 = vcmask 1040384   ;;  %vm676_vm9 = vcmask 1044480  }
  0xd1   :  { %v163_v11 = vsel %vm156_vm12, %v159_v4, %v162_v5  ;;  %v370_v17 = vsel %vm363_vm13, %v366_v6, %v369_v8  ;;  %v580_v36 = vsel %vm578_vm7, %v1118_v26, 0  ;;  %v678_v32 = vsel %vm676_vm9, %v1124_v13, 0  ;;  %v1134_v26 = vld [vmem:[%s1447_s7] sm:$0xff]  }
  0xd2   :  { %v164_v22 = vsel %vm154_vm11, nan, %v163_v11  ;;  %v371_v24 = vsel %vm154_vm11, nan, %v370_v17  ;;  %1059 = vmatpush3.bf16.msra.mxu0 %v678_v32  ;;  %v848_v57 = vsel %vm676_vm9, %v1125_v51, 0  ;;  %vm721_vm11 = vcmask 130048   ;;  %v1131_v11 = vld [vmem:[%s1447_s7 + $0x18] sm:$0xff]  }
  0xd3   :  { %v478_v33 = vsel %vm41_vm2, %v164_v22, %v371_v24  ;;  %1060 = vmatprep.subr.bf16.mxu0 %v1160_v3 }
  0xd6   :  { %v1144_v9 = vpop.eup %1143  ;;  %1061 = vmatpush3.bf16.msra.mxu0 %v1126_v41 }
  0xd7   :  { %v1146_v10 = vpop.eup %1145  ;;  %v264_v14 = vxor.u32 2147483648, %v1144_v9  ;;  %1062 = vmatprep.subr.bf16.mxu0 %v1160_v3 }
  0xd8   :  { %v261_v18 = vxor.u32 2147483648, %v1146_v10 }
  0xd9   :  { %v265_v19 = vsel %vm263_vm0, %v264_v14, %v1146_v10  ;;  %v473_v21 = vsel %vm471_vm3, %v264_v14, %v1146_v10  ;;  %v1130_v10 = vld [vmem:[%s1449_s2] sm:$0xff]   ;;  %v1132_v14 = vld [vmem:[%s1447_s7 + $0x10] sm:$0xff]  }
  0xda   :  { %v262_v23 = vsel %vm260_vm15, %v1144_v9, %v261_v18  ;;  %v470_v25 = vsel %vm468_vm5, %v1144_v9, %v261_v18  ;;  %1063 = vmatpush3.bf16.msra.mxu0 %v1127_v38 }
  0xdb   :  { %v266_v28 = vsel %vm259_vm14, %v262_v23, %v265_v19  ;;  %v474_v29 = vsel %vm467_vm4, %v470_v25, %v473_v21  ;;  %1064 = vmatprep.subr.bf16.mxu0 %v1160_v3  ;;  %v1133_v25 = vld [vmem:[%s1447_s7 + $0x8] sm:$0xff]  }
  0xdc   :  { %v267_v30 = vsel %vm257_vm6, nan, %v266_v28  ;;  %v475_v31 = vsel %vm257_vm6, nan, %v474_v29 }
  0xdd   :  { %v479_v15 = vsel %vm41_vm2, %v267_v30, %v475_v31  ;;  %vm574_vm2 = vcmask 539648  }
  0xde   :  { %v491_v35 = vpack.c.bf16 %v479_v15, %v478_v33  ;;  %1065 = vmatpush3.bf16.msra.mxu0 %v1128_v40  ;;  %v1135_v15 = vld [vmem:[%s1450_s9 + $0x8] sm:$0xff]  }
  0xdf   :  { %1066 = vmatprep.subr.bf16.mxu0 %v1160_v3 }
  0xe0   :  { %1041 = vmatmul.mubr.msk.bf16.vlgmr.msra.gmra.mxu1 %vm493_vm8, %v491_v35  ;;  %v1136_v35 = vld [vmem:[%s1450_s9] sm:$0xff]  }
  0xe1   :  { %1045 = vmatpush3.bf16.msra.mxu1 %v580_v36  ;;  %1054 = vmatprep.mubr.msk.bf16.mxu1 %vm1161_vm1, %v1160_v3  ;;  %v1002_v36 = vld [vmem:[%s1451_s8] ss:$0 sm:$0xff] }
  0xe2   :  { %1046 = vmatprep.subr.bf16.mxu1 %v1160_v3  ;;  %1067 = vmatpush3.bf16.msra.mxu0 %v1129_v42 }
  0xe3   :  { %1078 = vmatprep.subr.bf16.mxu0 %v1160_v3 }
  0xe5   :  { %1047 = vmatpush3.bf16.msra.mxu1 %v1119_v20 }
  0xe6   :  { %1048 = vmatprep.subr.bf16.mxu1 %v1160_v3 }
  0xe9   :  { %1049 = vmatpush3.bf16.msra.mxu1 %v1120_v7 }
  0xea   :  { %1050 = vmatprep.subr.bf16.mxu1 %v1160_v3 }
  0xed   :  { %1051 = vmatpush3.bf16.msra.mxu1 %v1121_v37 }
  0xee   :  { %1052 = vmatprep.subr.bf16.mxu1 %v1160_v3 }
  0xf1   :  { %1053 = vmatpush3.bf16.msra.mxu1 %v1122_v39 }
  0xf2   :  { %1072 = vmatprep.subr.bf16.mxu1 %v1160_v3 }
  0xf4   :  { %1055 = vmatmul.mubr.msk.bf16.vlgmr.msra.gmra.mxu1 %vm574_vm2, %v1123_v12 }
  0xf5   :  { %1074 = vmatprep.mubr.msk.bf16.mxu1 %vm1161_vm1, %v1160_v3  ;;  %1073 = vmatpush3.bf16.msra.mxu1 %v1130_v10 }
  0xf6   :  { %1092 = vmatprep.subr.bf16.mxu1 %v1160_v3 }
 0x1a0   :  { %v535_v43 = vpop.f32.mrf.mxu1 }
 0x1a2   :  { %v1042_v45 = vpop.f32.mrf.mxu1 }
 0x1a4   :  { %v538_v46 = vpop.f32.mrf.mxu1 }
 0x1a6   :  { %v1043_v47 = vpop.f32.mrf.mxu1 }
 0x1b4   :  { %v616_v48 = vpop.f32.mrf.mxu1 }
 0x1b5   :  { %v617_v49 = vadd.f32 %v616_v48, %v535_v43 }
 0x1b6   :  { %v1056_v44 = vpop.f32.mrf.mxu1 }
 0x1b7   :  { %v630_v55 = vadd.f32 %v993_v50, %v617_v49 }
 0x1b8   :  { %v619_v16 = vpop.f32.mrf.mxu1 }
 0x1b9   :  { %v620_v52 = vadd.f32 %v619_v16, %v538_v46 }
 0x1ba   :  { %v1057_v53 = vpop.f32.mrf.mxu1 }
 0x1bb   :  { %v631_v56 = vadd.f32 %v993_v50, %v620_v52 }
 0x1bd   :  { %v632_v58 = vpack.c.bf16 %v631_v56, %v630_v55 }
 0x1bf   :  { %1069 = vmatmul.mubr.msk.bf16.vlgmr.msra.gmra.mxu0 %vm672_vm10, %v632_v58 }
 0x1c0   :  { %1079 = vmatpush3.bf16.msra.mxu0 %v848_v57  ;;  %1088 = vmatprep.mubr.msk.bf16.mxu0 %vm1161_vm1, %v1160_v3 }
 0x1c1   :  { %1080 = vmatprep.subr.bf16.mxu0 %v1160_v3 }
 0x1c4   :  { %1081 = vmatpush3.bf16.msra.mxu0 %v1131_v11 }
 0x1c5   :  { %1082 = vmatprep.subr.bf16.mxu0 %v1160_v3 }
 0x1c8   :  { %1083 = vmatpush3.bf16.msra.mxu0 %v1132_v14 }
 0x1c9   :  { %1084 = vmatprep.subr.bf16.mxu0 %v1160_v3 }
 0x1cc   :  { %1085 = vmatpush3.bf16.msra.mxu0 %v1133_v25 }
 0x1cd   :  { %1086 = vmatprep.subr.bf16.mxu0 %v1160_v3 }
 0x1d0   :  { %1087 = vmatpush3.bf16.msra.mxu0 %v1134_v26 }
 0x27f   :  { %v714_v59 = vpop.f32.mrf.mxu0 }
 0x280   :  { %v722_v34 = vsel %vm721_vm11, %v714_v59, -inf }
 0x281   :  { %723 = vmax.xlane.f32.xlu1 %v722_v34  ;;  %v1070_v60 = vpop.f32.mrf.mxu0 }
 0x283   :  { %v717_v54 = vpop.f32.mrf.mxu0 }
 0x284   :  { %v725_v61 = vsel %vm721_vm11, %v717_v54, -inf }
 0x285   :  { %726 = vmax.xlane.f32.xlu1 %v725_v61  ;;  %v1071_v62 = vpop.f32.mrf.mxu0 }
 0x30a   :  { %v724_v63 = vpop.xlane.xlu1 %723 }
 0x30b   :  { %v728_v0 = vsub.f32 %v714_v59, %v724_v63 }
 0x30d   :  { %v730_v1 = vmul.f32 1.442695, %v728_v0 }
 0x30e   :  { %v727_v27 = vpop.xlane.xlu1 %726 }
 0x30f   :  { %1147 = vpow2.f32 %v730_v1  ;;  %v729_v2 = vsub.f32 %v717_v54, %v727_v27 }
 0x311   :  { %v732_v4 = vmul.f32 1.442695, %v729_v2 }
 0x313   :  { %1149 = vpow2.f32 %v732_v4 }
 0x31c   :  { %v1148_v5 = vpop.eup %1147 }
 0x31d   :  { %v734_v6 = vsel %vm721_vm11, %v1148_v5, 0.0 }
 0x31e   :  { %735 = vadd.xlane.f32.xlu0 %v734_v6 }
 0x320   :  { %v1150_v8 = vpop.eup %1149 }
 0x321   :  { %v737_v9 = vsel %vm721_vm11, %v1150_v8, 0.0 }
 0x322   :  { %738 = vadd.xlane.f32.xlu1 %v737_v9 }
 0x3a7   :  { %v736_v17 = vpop.xlane.xlu0 %735 }
 0x3a8   :  { %1151 = vrcp.f32 %v736_v17 }
 0x3ab   :  { %v739_v18 = vpop.xlane.xlu1 %738 }
 0x3ac   :  { %1153 = vrcp.f32 %v739_v18 }
 0x3b5   :  { %v1152_v19 = vpop.eup %1151 }
 0x3b6   :  { %v742_v22 = vmul.f32 %v1152_v19, %v1148_v5 }
 0x3b9   :  { %v1154_v21 = vpop.eup %1153 }
 0x3ba   :  { %v743_v23 = vmul.f32 %v1154_v21, %v1150_v8 }
 0x3bc   :  { %v744_v24 = vpack.c.bf16 %v743_v23, %v742_v22 }
 0x3be   :  { %1075 = vmatmul.mubr.msk.bf16.vlgmr.msra.gmra.mxu1 %vm721_vm11, %v744_v24 }
 0x3bf   :  { %1096 = vmatprep.mubr.msk.bf16.mxu1 %vm1161_vm1, %v1160_v3  ;;  %1093 = vmatpush3.bf16.msra.mxu1 %v1135_v15  ;;  %vm917_vm1 = vcmask 261120  }
 0x3c0   :  { %1094 = vmatprep.subr.bf16.mxu1 %v1160_v3  ;;  %v1009_v3 = vld [vmem:[%s1452_s10] ss:$0 sm:$0xff] }
 0x3c3   :  { %1095 = vmatpush3.bf16.msra.mxu1 %v1136_v35 }
 0x47e   :  { %v790_v28 = vpop.f32.mrf.mxu1 }
 0x480   :  { %v1076_v29 = vpop.f32.mrf.mxu1 }
 0x482   :  { %v793_v30 = vpop.f32.mrf.mxu1 }
 0x483   :  { %v797_v31 = vpack.c.bf16 %v793_v30, %v790_v28 }
 0x484   :  { %v1077_v33 = vpop.f32.mrf.mxu1 }
 0x485   :  { %1089 = vmatmul.mubr.msk.bf16.vlgmr.msra.gmra.mxu0 %vm672_vm10, %v797_v31 }
 0x545   :  { %v884_v20 = vpop.f32.mrf.mxu0 }
 0x546   :  { %v885_v7 = vadd.f32 %v1002_v36, %v884_v20 }
 0x547   :  { %v1090_v37 = vpop.f32.mrf.mxu0 }
 0x548   :  { %1155 = vtanh.f32 %v885_v7 }
 0x549   :  { %v887_v39 = vpop.f32.mrf.mxu0 }
 0x54a   :  { %v888_v12 = vadd.f32 %v1002_v36, %v887_v39 }
 0x54b   :  { %v1091_v13 = vpop.f32.mrf.mxu0 }
 0x54c   :  { %1157 = vtanh.f32 %v888_v12 }
 0x555   :  { %v1156_v32 = vpop.eup %1155 }
 0x559   :  { %v1158_v41 = vpop.eup %1157 }
 0x55a   :  { %v893_v38 = vpack.c.bf16 %v1158_v41, %v1156_v32 }
 0x55c   :  { %1097 = vmatmul.mubr.msk.bf16.vlgmr.msra.gmra.mxu1 %vm917_vm1, %v893_v38 }
 0x61c   :  { %v955_v40 = vpop.f32.mrf.mxu1 }
 0x61d   :  { %v956_v42 = vadd.f32 %v1009_v3, %v955_v40 }
 0x61e   :  { %v1098_v43 = vpop.f32.mrf.mxu1 }
 0x61f   :  { %962 = vst [vmem:[%s1453_s11] sm:$0xff] %v956_v42 }
 0x620   :  { %v958_v45 = vpop.f32.mrf.mxu1 }
 0x621   :  { %v959_v46 = vadd.f32 %v1009_v3, %v958_v45 }
 0x622   :  { %v1099_v47 = vpop.f32.mrf.mxu1 }
 0x623   :  { %963 = vst [vmem:[%s1453_s11 + $0x8] sm:$0xff] %v959_v46 }

</bundles_post_ra>
